<compile_context>
chip_gen: v7x
topology: tpu7x:2x2x1
jax: 0.10.0
libtpu: 0.0.40
codegen_flags: <defaults>
</compile_context>

<pallas_src>
import functools
import math

import jax
import jax.numpy as jnp
from jax import lax
from jax.experimental import pallas as pl
from jax.experimental.pallas import tpu as pltpu

EPS = 1e-5  # nn.InstanceNorm2d default eps


@functools.lru_cache(maxsize=None)
def _roll_matches_np_roll() -> bool:
    """One-time probe of pltpu.roll's rotate convention.

    Returns True if pltpu.roll follows np.roll semantics
    (result[i] = x[i - shift]).  The shift math below adapts to either
    convention, so the kernel is correct regardless of the underlying
    tpu.dynamic_rotate direction.
    """
    def probe(x_ref, o_ref):
        o_ref[...] = pltpu.roll(x_ref[...], 1, 1)

    x = lax.broadcasted_iota(jnp.float32, (8, 128), 1)
    out = pl.pallas_call(
        probe, out_shape=jax.ShapeDtypeStruct((8, 128), jnp.float32))(x)
    return bool(out[0, 0] == 127.0)


# --------------------------------------------------------------------------
# Fused encoder kernel.  Grid: (N,) — one batch element per grid step.
# refs layout:
#   [x_ref, w_ref_0..L-1, idx_ref_0..L-1, sel_ref_1..L-1, o_ref_0..L-1, patch]
#   x_ref    : (1, Cin0, H0*W0)        flat NC(HW) input tile (lane-dense)
#   w_ref_s  : (Cout_s, 9*Cin_s) bf16  transposed im2col conv weight
#   idx_ref_s: (2, H_s*W_s) int32      [row index; col index] per position
#   sel_ref_s: (4*HW_s, HW_s) bf16     0/1 maxpool compaction matrix
#   o_ref_s  : (1, Cout_s, H_s*W_s)    channel-major stage output
#   patch    : VMEM (max 9*Cin, max HW) f32, reused by every stage
# --------------------------------------------------------------------------
def _make_encoder_kernel(stages, eps, roll_is_np):
    L = len(stages)

    def lane_shift(x, delta, size):
        # v[..., p] = x[..., p + delta]  (wrap-around gets masked by caller)
        if delta % size == 0:
            return x
        amt = (-delta) % size if roll_is_np else delta % size
        return pltpu.roll(x, amt, 1)

    def kernel(*refs):
        x_ref = refs[0]
        w_refs = refs[1:1 + L]
        idx_refs = refs[1 + L:1 + 2 * L]
        sel_refs = refs[1 + 2 * L:3 * L]
        o_refs = refs[3 * L:4 * L]
        patch_ref = refs[4 * L]

        y_prev = None
        for s, (ci, co, h, w) in enumerate(stages):
            hw = h * w
            if s == 0:
                act = x_ref[0]                                  # (ci, hw) f32
            else:
                # MaxPool2d(2), channel-major: two lane rolls + maxes put the
                # 2x2-window max at every even-row/even-col anchor; a tiny
                # exact 0/1 selection matmul compacts anchors to (ci, hw).
                hwp, wp = 4 * hw, 2 * w
                t = jnp.maximum(y_prev, lane_shift(y_prev, 1, hwp))
                u = jnp.maximum(t, lane_shift(t, wp, hwp))
                act = jnp.dot(u.astype(jnp.bfloat16), sel_refs[s - 1][...],
                              preferred_element_type=jnp.float32)

            rowi = idx_refs[s][0:1, :]                          # (1, hw) int32
            colj = idx_refs[s][1:2, :]

            # im2col (zero padding=1) without a padded scratch: each tap is a
            # lane roll (XLU) of the flat activation plus a border mask (VPU).
            # Every patch write is lane-dense (hw lanes).
            for dy in range(3):
                for dx in range(3):
                    k = dy * 3 + dx
                    off = (dy - 1) * w + (dx - 1)
                    tap = lane_shift(act, off, hw)
                    conds = []
                    if dy == 0:
                        conds.append(rowi >= 1)
                    elif dy == 2:
                        conds.append(rowi <= h - 2)
                    if dx == 0:
                        conds.append(colj >= 1)
                    elif dx == 2:
                        conds.append(colj <= w - 2)
                    if conds:
                        m = conds[0]
                        for c_ in conds[1:]:
                            m = jnp.logical_and(m, c_)
                        tap = jnp.where(m, tap, 0.0)
                    patch_ref[k * ci:(k + 1) * ci, 0:hw] = tap

            # Conv as ONE MXU matmul: (co, 9*ci) x (9*ci, hw) -> (co, hw).
            # bf16 inputs, f32 accumulation; result is already channel-major
            # and lane-dense, so no transpose before the store.
            y = jnp.dot(w_refs[s][...],
                        patch_ref[0:9 * ci, 0:hw].astype(jnp.bfloat16),
                        preferred_element_type=jnp.float32)

            # InstanceNorm2d(affine=False, biased var, eps) + ReLU,
            # single-pass statistics over the spatial (lane) axis.
            mean = jnp.mean(y, axis=1, keepdims=True)
            msq = jnp.mean(y * y, axis=1, keepdims=True)
            var = msq - mean * mean
            y = jnp.maximum((y - mean) * lax.rsqrt(var + eps), 0.0)

            o_refs[s][0] = y                                    # lane-dense vst
            y_prev = y

    return kernel


# --------------------------------------------------------------------------
# Wrapper: NCHW in, list of NCHW stage outputs (matches the PyTorch module).
# weights are given in HWIO layout (3, 3, Cin, Cout) per layer.
# --------------------------------------------------------------------------
def unet_encoder_forward(x_nchw, weights_hwio, *, eps=EPS):
    N, c0, H, W = x_nchw.shape
    L = len(weights_hwio)
    assert H % (2 ** (L - 1)) == 0 and W % (2 ** (L - 1)) == 0, \
        "even pooling dims required"

    # Free reshape (no transpose): channel-major, spatial on lanes.
    x_flat = x_nchw.reshape(N, c0, H * W).astype(jnp.float32)

    stages = []            # (ci, co, h, w) per stage
    w_ts, idxs, sels = [], [], []
    ci, h, w = c0, H, W
    for s, wt in enumerate(weights_hwio):
        if s > 0:
            h //= 2
            w //= 2
        co = wt.shape[-1]
        hw = h * w
        stages.append((ci, co, h, w))
        # (3,3,ci,co) -> (9*ci, co) -> transposed (co, 9*ci), bf16 MXU input.
        w_ts.append(jnp.transpose(wt.reshape(9 * ci, co)).astype(jnp.bfloat16))
        # Precomputed row/col indices -> border masks without in-kernel div/mod.
        q = jnp.arange(hw, dtype=jnp.int32)
        idxs.append(jnp.stack([q // w, q % w], axis=0))
        if s > 0:
            # 0/1 compaction matrix: picks flat position 2i*wp + 2j for (i,j).
            wp, hwp = 2 * w, 4 * hw
            src = 2 * (q // w) * wp + 2 * (q % w)
            p_idx = jnp.arange(hwp, dtype=jnp.int32)
            sels.append((p_idx[:, None] == src[None, :]).astype(jnp.bfloat16))
        ci = co

    kernel = _make_encoder_kernel(stages, eps, _roll_matches_np_roll())

    in_specs = [pl.BlockSpec((1, c0, H * W), lambda n: (n, 0, 0))]
    for (cin, co, sh, sw) in stages:
        in_specs.append(pl.BlockSpec((co, 9 * cin), lambda n: (0, 0)))
    for (cin, co, sh, sw) in stages:
        in_specs.append(pl.BlockSpec((2, sh * sw), lambda n: (0, 0)))
    for (cin, co, sh, sw) in stages[1:]:
        in_specs.append(pl.BlockSpec((4 * sh * sw, sh * sw), lambda n: (0, 0)))

    out_shape = tuple(jax.ShapeDtypeStruct((N, co, sh * sw), jnp.float32)
                      for (cin, co, sh, sw) in stages)
    out_specs = tuple(pl.BlockSpec((1, co, sh * sw), lambda n: (n, 0, 0))
                      for (cin, co, sh, sw) in stages)

    # ONE shared patch scratch, sized for the largest stage and reused.
    max_rows = max(9 * cin for (cin, co, sh, sw) in stages)
    max_cols = max(sh * sw for (cin, co, sh, sw) in stages)

    outs = pl.pallas_call(
        kernel,
        out_shape=out_shape,
        grid=(N,),
        in_specs=in_specs,
        out_specs=out_specs,
        scratch_shapes=[pltpu.VMEM((max_rows, max_cols), jnp.float32)],
        compiler_params=pltpu.CompilerParams(
            dimension_semantics=("parallel",),
            vmem_limit_bytes=48 * 1024 * 1024),
    )(x_flat, *w_ts, *idxs, *sels)

    # Free reshape: (N, Cout, H*W) -> NCHW (N, Cout, H, W).
    return [o.reshape(N, co, sh, sw)
            for o, (cin, co, sh, sw) in zip(outs, stages)]


# --------------------------------------------------------------------------
# Pure-JAX reference (correctness check only).  Conv inputs are cast to bf16
# (like the kernel's MXU inputs); accumulation and norm math stay in f32.
# --------------------------------------------------------------------------
def _single_conv_ref(x_nhwc, w_hwio, eps=EPS):
    y = lax.conv_general_dilated(
        x_nhwc.astype(jnp.bfloat16), w_hwio.astype(jnp.bfloat16),
        window_strides=(1, 1), padding=((1, 1), (1, 1)),
        dimension_numbers=("NHWC", "HWIO", "NHWC"),
        preferred_element_type=jnp.float32)
    mean = jnp.mean(y, axis=(1, 2), keepdims=True)
    var = jnp.mean((y - mean) ** 2, axis=(1, 2), keepdims=True)
    y = (y - mean) / jnp.sqrt(var + eps)
    return jnp.maximum(y, 0.0)


def _maxpool2_ref(x):
    N, H, W, C = x.shape
    return jnp.max(x.reshape(N, H // 2, 2, W // 2, 2, C), axis=(2, 4))


def _forward_ref_nhwc(x_nhwc, weights_hwio):
    outs = []
    x = _single_conv_ref(x_nhwc, weights_hwio[0])
    outs.append(x)
    for wt in weights_hwio[1:]:
        x = _maxpool2_ref(x)
        x = _single_conv_ref(x, wt)
        outs.append(x)
    return outs


if __name__ == "__main__":
    key = jax.random.PRNGKey(0)

    n_channels_in = 4
    n_channels_hidden = [8, 16, 32]
    N, H, W = 2, 16, 16

    # Deterministic synthetic parameters (Conv2d 3x3, bias=False per layer),
    # stored HWIO = (3, 3, Cin, Cout).
    chans = [n_channels_in] + list(n_channels_hidden)
    weights = []
    for cin, cout in zip(chans[:-1], chans[1:]):
        key, sub = jax.random.split(key)
        wt = jax.random.normal(sub, (3, 3, cin, cout), jnp.float32)
        weights.append(wt * (1.0 / math.sqrt(9.0 * cin)))

    # Input in PyTorch's NCHW convention (same as the nn.Module).
    key, sub = jax.random.split(key)
    x_nchw = jax.random.normal(sub, (N, n_channels_in, H, W), jnp.float32)

    outs = unet_encoder_forward(x_nchw, weights)
    outs = [jax.block_until_ready(o) for o in outs]

    # Verify against the pure-JAX reference (converted to NCHW).
    refs_nhwc = _forward_ref_nhwc(jnp.transpose(x_nchw, (0, 2, 3, 1)), weights)
    refs = [jnp.transpose(r, (0, 3, 1, 2)) for r in refs_nhwc]
    for o, r in zip(outs, refs):
        assert o.shape == r.shape, (o.shape, r.shape)
        err = float(jnp.max(jnp.abs(o - r)))
        assert jnp.allclose(o, r, atol=5e-3, rtol=5e-3), err

    print("KERNEL_OK")
</pallas_src>

<mosaic_0001>
module attributes {stable_mosaic.version = 11 : i64} {
  func.func @probe(%arg0: memref<8x128xf32, #tpu.memory_space<vmem>>, %arg1: memref<8x128xf32, #tpu.memory_space<vmem>>) attributes {dimension_semantics = [], scalar_prefetch = 0 : i64, scratch_operands = 0 : i64, tpu.core_type = #tpu.core_type<tc>} {
    %c0 = arith.constant 0 : index
    %c0_0 = arith.constant 0 : index
    %0 = vector.load %arg0[%c0, %c0_0] : memref<8x128xf32, #tpu.memory_space<vmem>>, vector<8x128xf32>
    %c1_i32 = arith.constant 1 : i32
    %1 = tpu.dynamic_rotate %0 by %c1_i32 dim 1 : vector<8x128xf32>, i32 -> vector<8x128xf32>
    %c0_1 = arith.constant 0 : index
    %c0_2 = arith.constant 0 : index
    %2 = vector.load %arg1[%c0_1, %c0_2] : memref<8x128xf32, #tpu.memory_space<vmem>>, vector<8x128xf32>
    tpu.vector_store %arg1[%c0_1, %c0_2], %1 {strides = array<i32>} : memref<8x128xf32, #tpu.memory_space<vmem>>, vector<8x128xf32>,
    return
  }
}

</mosaic_0001>

<bundles_post_ra>
// kernel: tpu_custom_call.1
= control target key start
LH: loop header
LB: loop body
LE: loop exit
PB: predicated region body
PF: predicated region fallthrough
CT: control target
= control target key end

     0   :  { %6 = vsyncpa [#allocation3], 0  ;;  %s128_s0 = inlined_call_operand.hbm [shape: f32[8,128], index: 0, kind: input, shape index: {}]   ;;  %s129_s1 = inlined_call_operand.hbm [shape: f32[8,128], index: 1, kind: output, shape index: {}]  }
   0x1   :  { %7 = vsyncpa [#allocation4], 0  ;;  %s91_s6 = smov [#allocation2]   ;;  %s43_s10 = scalar_lea.hbm %s128_s0, 128 }
   0x2   :  { %s14_s7 = sshll.u32 %s91_s6, 4  ;;  %p44_p0 = scmp.ne.s32.totalorder %s128_s0, %s43_s10  ;;  %s15_s7 = int_to_ptr.vmem [resolvable:$true] %s14_s7 }
   0x3   :  { %p47_p1 = scmp.lt.u32.totalorder %s43_s10, %s128_s0 }
   0x5   :  { %p49_p2 = pnand %p47_p1, %p44_p0 }
   0x7   :  { %52 = shalt.err (!%p49_p2)
}
   0x8   :  { %s53_s15 = scalar_lea.vmem %s15_s7, 128  ;;  %p58_p4 = scmp.lt.s32.totalorder %s15_s7, %s15_s7 }
   0x9   :  { %p54_p3 = scmp.ne.s32.totalorder %s15_s7, %s53_s15  ;;  %p59_p5 = scmp.lt.s32.totalorder %s53_s15, %s53_s15 }
   0xb   :  { %p60_p6 = por %p59_p5, %p58_p4 }
   0xd   :  { %p61_p7 = pnand %p60_p6, %p54_p3 }
   0xf   :  { %64 = shalt.err (!%p61_p7)
}
  0x10   :  { %17 = dma.hbm_to_vmem [thread:$0]  %s128_s0, 128, %s15_s7, [#allocation3]  }
  0x11   :  { %87 = dma.done.wait [#allocation3], 128  }
  0x12   :  { %88 = vsyncadd [#allocation3], 4294967168  ;;  %v21_v0 = vld [vmem:[#allocation2] sm:$0xff]  ;;  %s92_s18 = smov 1   ;;  %s93_s19 = smov [#allocation5]  }
  0x13   :  { %22 = vrot.lane.b32.xlu0 %v21_v0, %s92_s18  ;;  %s31_s20 = sshll.u32 %s93_s19, 4  ;;  %s32_s20 = int_to_ptr.vmem [resolvable:$true] %s31_s20 }
  0x14   :  { %s65_s21 = scalar_lea.vmem %s32_s20, 128  ;;  %p70_p9 = scmp.lt.s32.totalorder %s32_s20, %s32_s20 }
  0x15   :  { %p66_p8 = scmp.ne.s32.totalorder %s32_s20, %s65_s21  ;;  %p71_p10 = scmp.lt.s32.totalorder %s65_s21, %s65_s21 }
  0x17   :  { %p72_p11 = por %p71_p10, %p70_p9 }
  0x19   :  { %p73_p12 = pnand %p72_p11, %p66_p8 }
  0x85   :  { %v23_v1 = vpop.permute.xlu0 %22 }
  0x86   :  { %24 = vst [vmem:[#allocation5] sm:$0xff] %v23_v1 }
  0x87   :  { %76 = shalt.err (!%p73_p12)
}
  0x88   :  { %s77_s0 = scalar_lea.hbm %s129_s1, 128 }
  0x89   :  { %p78_p13 = scmp.ne.s32.totalorder %s129_s1, %s77_s0  ;;  %p81_p0 = scmp.lt.u32.totalorder %s77_s0, %s129_s1 }
  0x8b   :  { %p83_p1 = pnand %p81_p0, %p78_p13 }
  0x8d   :  { %86 = shalt.err (!%p83_p1)
}
  0x8e   :  { %34 = dma.vmem_to_hbm [thread:$0]  %s32_s20, 128, %s129_s1, [#allocation4]  }
  0x8f   :  { %89 = dma.done.wait [#allocation4], 128  }
  0x90   :  { %90 = vsyncadd [#allocation4], 4294967168 }
  0x91   :  { %38 = vsyncpa [#allocation3], 1 }
  0x92   :  { %39 = vsyncpa [#allocation4], 1 }

</bundles_post_ra>
